<compile_context>
chip_gen: v5e
topology: v5e:2x2
jax: 0.10.0
libtpu: 0.0.40
codegen_flags: <defaults>
</compile_context>

<pallas_src>
import functools

import jax
import jax.numpy as jnp
from jax import lax
from jax.experimental import pallas as pl
from jax.experimental.pallas import tpu as pltpu


def _gsa_kernel(x_ref, sel_ref, selt_ref, o_ref, *, bt, gp, k, p, eps):
    """One grid step = `bt` batch elements.

    x_ref / o_ref : (bt, G, S)   G = channels, S = H*W (lane axis)
    sel_ref       : (gp, G)      one-hot group membership (rows >= groups are 0)
    selt_ref      : (G, gp)      its transpose (precomputed host-side)
    """
    S = x_ref.shape[2]
    sel = sel_ref[...]                                     # (gp, G) f32
    selt = selt_ref[...]                                   # (G, gp) f32

    # ---- group "norms": rank on sum(|x|^p) + eps (monotone surrogate) -----
    # One MXU matmul per merged batch replaces the sublane channel reduction.
    slabs = []
    for b in range(bt):
        xb = x_ref[b].astype(jnp.float32)                  # (G, S), read once
        if p == 2.0:
            e = xb * xb
        elif p == 1.0:
            e = jnp.abs(xb)
        else:
            e = jnp.power(jnp.abs(xb), p)
        slabs.append(jnp.dot(sel, e, preferred_element_type=jnp.float32) + eps)
    nrm = slabs[0] if bt == 1 else jnp.concatenate(slabs, axis=0)  # (bt*gp, S)

    rows = bt * gp
    iota = lax.broadcasted_iota(jnp.int32, (rows, S), 1)

    # ---- vectorized iterative top-k over the lane axis (all rows at once) --
    # Two row-wise keepdims XLU reductions per round (no scalar relayouts);
    # earliest index wins ties (matches torch.topk / lax.top_k ordering).
    def body(_, carry):
        mask, rem = carry
        m = jnp.max(rem, axis=-1, keepdims=True)                    # (rows, 1)
        idx = jnp.min(jnp.where(rem == m, iota, S),
                      axis=-1, keepdims=True)                       # (rows, 1)
        hit = iota == idx
        mask = jnp.where(hit, jnp.float32(1.0), mask)
        rem = jnp.where(hit, jnp.float32(-jnp.inf), rem)
        return mask, rem

    mask0 = jnp.zeros((rows, S), jnp.float32)
    if k <= 8:
        mask_slab, _ = lax.fori_loop(0, k, body, (mask0, nrm), unroll=True)
    else:
        mask_slab, _ = lax.fori_loop(0, k, body, (mask0, nrm))

    # ---- broadcast group masks to channels (MXU) + one dense store/batch ---
    for b in range(bt):
        mb = mask_slab[b * gp:(b + 1) * gp, :]                      # (gp, S)
        mfull = jnp.dot(selt, mb, preferred_element_type=jnp.float32)  # (G, S)
        o_ref[b] = x_ref[b] * mfull.astype(o_ref.dtype)


def _choose_batch_block(B, bytes_per_batch, target_bytes=2 << 20):
    """Merge batches per grid step (amortize ~0.35 us/step overhead) while
    keeping >= 2 grid steps when possible so both v7x TensorCores get work."""
    bt = int(max(1, min(B, target_bytes // max(1, bytes_per_batch))))
    while bt > 1 and -(-B // bt) < 2:
        bt -= 1
    while B % bt:
        bt -= 1
    return bt


def group_sparse_activation(x, *, k, groups, norm=2, epsilon=1e-9):
    """x: NCHW float array. group axis = C (axis 1), sparse axes = (H, W)."""
    B, C, H, W = x.shape
    S = H * W
    G = C
    assert G % groups == 0, "channel count must be divisible by `groups`"
    gsize = G // groups
    _k = min(k, S)
    gp = ((groups + 7) // 8) * 8        # pad group rows to a sublane multiple

    xp = x.reshape(B, G, S)             # (batch, group-axis, sparse-axis)

    # One-hot group membership (and its transpose), built host-side so the
    # kernel never transposes a sub-tile array in VMEM.
    gidx = jnp.arange(G, dtype=jnp.int32) // gsize
    sel = (jnp.arange(gp, dtype=jnp.int32)[:, None] == gidx[None, :])
    sel = sel.astype(jnp.float32)       # (gp, G)
    selt = sel.T                        # (G, gp)

    bt = _choose_batch_block(B, G * S * x.dtype.itemsize)

    kernel = functools.partial(_gsa_kernel, bt=bt, gp=gp, k=_k,
                               p=float(norm), eps=float(epsilon))

    # VMEM budget: double-buffered in+out blocks plus f32 norm/mask slabs.
    # (If a single (G, S) f32 tile ever approaches ~8 MiB, add a channel/group
    #  grid axis instead of growing this further — keeps v7x's 64 MiB happy.)
    block_bytes = bt * G * S * x.dtype.itemsize
    slab_bytes = bt * gp * S * 4
    vmem_bytes = int(min(max(4 * block_bytes + 6 * slab_bytes + (1 << 20),
                             16 << 20), 48 << 20))

    out = pl.pallas_call(
        kernel,
        out_shape=jax.ShapeDtypeStruct((B, G, S), x.dtype),
        grid_spec=pltpu.PrefetchScalarGridSpec(
            num_scalar_prefetch=0,
            grid=(B // bt,),
            in_specs=[pl.BlockSpec((bt, G, S), lambda b: (b, 0, 0)),
                      pl.BlockSpec((gp, G), lambda b: (0, 0)),
                      pl.BlockSpec((G, gp), lambda b: (0, 0))],
            out_specs=pl.BlockSpec((bt, G, S), lambda b: (b, 0, 0)),
        ),
        compiler_params=pltpu.CompilerParams(
            dimension_semantics=("parallel",),
            vmem_limit_bytes=vmem_bytes),
    )(xp, sel, selt)

    return out.reshape(B, C, H, W)


def _reference(x, *, k, groups, norm=2, epsilon=1e-9):
    """Plain-JAX reference of the intended forward (for verification)."""
    B, C, H, W = x.shape
    S = H * W
    gsize = C // groups
    xg = x.reshape(B, groups, gsize, S).astype(jnp.float32)
    norms = jnp.power(
        jnp.sum(jnp.power(jnp.abs(xg), norm), axis=2) + epsilon,
        1.0 / norm)                                     # (B, groups, S)
    _k = min(k, S)
    _, idx = lax.top_k(norms, _k)                       # (B, groups, k)
    mask = jnp.sum(jax.nn.one_hot(idx, S, dtype=jnp.float32), axis=-2)
    out = xg * mask[:, :, None, :]
    return out.reshape(B, C, H, W).astype(x.dtype)


if __name__ == "__main__":
    key = jax.random.PRNGKey(0)
    x = jax.random.normal(key, (2, 4, 16, 16), dtype=jnp.float32)  # NCHW

    out = group_sparse_activation(x, k=8, groups=2, norm=2, epsilon=1e-9)
    out = jax.block_until_ready(out)

    ref = _reference(x, k=8, groups=2, norm=2, epsilon=1e-9)
    assert out.shape == x.shape and out.dtype == x.dtype
    assert jnp.allclose(out, ref, atol=1e-5), "Pallas kernel mismatch vs reference"

    print("KERNEL_OK")
</pallas_src>

<mosaic_0001>
module attributes {stable_mosaic.version = 11 : i64} {
  func.func @_gsa_kernel(%arg0: i32, %arg1: memref<1x4x256xf32, #tpu.memory_space<vmem>>, %arg2: memref<8x4xf32, #tpu.memory_space<vmem>>, %arg3: memref<4x8xf32, #tpu.memory_space<vmem>>, %arg4: memref<1x4x256xf32, #tpu.memory_space<vmem>>) attributes {dimension_semantics = [#tpu.dimension_semantics<parallel>], iteration_bounds = array<i64: 2>, scalar_prefetch = 0 : i64, scratch_operands = 0 : i64, tpu.core_type = #tpu.core_type<tc>, window_params = [{transform_indices = @transform_0, window_bounds = array<i64: 1, 4, 256>}, {pipeline_mode = #tpu.pipeline_mode<synchronous>, transform_indices = @transform_1, window_bounds = array<i64: 8, 4>}, {pipeline_mode = #tpu.pipeline_mode<synchronous>, transform_indices = @transform_2, window_bounds = array<i64: 4, 8>}, {transform_indices = @transform_3, window_bounds = array<i64: 1, 4, 256>}]} {
    %c0 = arith.constant 0 : index
    %c0_0 = arith.constant 0 : index
    %0 = vector.load %arg2[%c0, %c0_0] : memref<8x4xf32, #tpu.memory_space<vmem>>, vector<8x4xf32>
    %c0_1 = arith.constant 0 : index
    %c0_2 = arith.constant 0 : index
    %1 = vector.load %arg3[%c0_1, %c0_2] : memref<4x8xf32, #tpu.memory_space<vmem>>, vector<4x8xf32>
    %c0_3 = arith.constant 0 : index
    %c0_4 = arith.constant 0 : index
    %c0_5 = arith.constant 0 : index
    %2 = vector.load %arg1[%c0_3, %c0_4, %c0_5] : memref<1x4x256xf32, #tpu.memory_space<vmem>>, vector<1x4x256xf32>
    %3 = vector.shape_cast %2 : vector<1x4x256xf32> to vector<4x256xf32>
    %4 = arith.mulf %3, %3 : vector<4x256xf32>
    %cst = arith.constant dense<0.000000e+00> : vector<8x256xf32>
    %5 = tpu.matmul %0, %4, %cst {dimension_numbers = #tpu.dot_dimension_numbers<[1], [0], [0], [1], [0, 0, 1, 1], [], []>} : vector<8x4xf32>, vector<4x256xf32>, vector<8x256xf32> -> vector<8x256xf32>
    %cst_6 = arith.constant 9.99999971E-10 : f32
    %6 = vector.broadcast %cst_6 : f32 to vector<8x256xf32>
    %7 = arith.addf %5, %6 : vector<8x256xf32>
    %8 = tpu.iota {dimensions = array<i32: 1>} : vector<8x256xi32>
    %cst_7 = arith.constant 0.000000e+00 : f32
    %9 = vector.broadcast %cst_7 : f32 to vector<8x256xf32>
    %c0_i32 = arith.constant 0 : i32
    %cst_8 = arith.constant dense<0xFF800000> : vector<8xf32>
    %10 = vector.multi_reduction <maximumf>, %7, %cst_8 [1] : vector<8x256xf32> to vector<8xf32>
    %11 = vector.shape_cast %10 : vector<8xf32> to vector<8x1xf32>
    %12 = vector.broadcast %11 : vector<8x1xf32> to vector<8x256xf32>
    %13 = arith.cmpf oeq, %7, %12 : vector<8x256xf32>
    %c256_i32 = arith.constant 256 : i32
    %14 = vector.broadcast %c256_i32 : i32 to vector<8x256xi32>
    %15 = arith.select %13, %8, %14 : vector<8x256xi1>, vector<8x256xi32>
    %cst_9 = arith.constant dense<2147483647> : vector<8xi32>
    %16 = vector.multi_reduction <minsi>, %15, %cst_9 [1] : vector<8x256xi32> to vector<8xi32>
    %17 = vector.shape_cast %16 : vector<8xi32> to vector<8x1xi32>
    %18 = vector.broadcast %17 : vector<8x1xi32> to vector<8x256xi32>
    %19 = arith.cmpi eq, %8, %18 : vector<8x256xi32>
    %cst_10 = arith.constant 1.000000e+00 : f32
    %20 = vector.broadcast %cst_10 : f32 to vector<8x256xf32>
    %21 = arith.select %19, %20, %9 : vector<8x256xi1>, vector<8x256xf32>
    %cst_11 = arith.constant 0xFF800000 : f32
    %22 = vector.broadcast %cst_11 : f32 to vector<8x256xf32>
    %23 = arith.select %19, %22, %7 : vector<8x256xi1>, vector<8x256xf32>
    %c1_i32 = arith.constant 1 : i32
    %cst_12 = arith.constant dense<0xFF800000> : vector<8xf32>
    %24 = vector.multi_reduction <maximumf>, %23, %cst_12 [1] : vector<8x256xf32> to vector<8xf32>
    %25 = vector.shape_cast %24 : vector<8xf32> to vector<8x1xf32>
    %26 = vector.broadcast %25 : vector<8x1xf32> to vector<8x256xf32>
    %27 = arith.cmpf oeq, %23, %26 : vector<8x256xf32>
    %c256_i32_13 = arith.constant 256 : i32
    %28 = vector.broadcast %c256_i32_13 : i32 to vector<8x256xi32>
    %29 = arith.select %27, %8, %28 : vector<8x256xi1>, vector<8x256xi32>
    %cst_14 = arith.constant dense<2147483647> : vector<8xi32>
    %30 = vector.multi_reduction <minsi>, %29, %cst_14 [1] : vector<8x256xi32> to vector<8xi32>
    %31 = vector.shape_cast %30 : vector<8xi32> to vector<8x1xi32>
    %32 = vector.broadcast %31 : vector<8x1xi32> to vector<8x256xi32>
    %33 = arith.cmpi eq, %8, %32 : vector<8x256xi32>
    %cst_15 = arith.constant 1.000000e+00 : f32
    %34 = vector.broadcast %cst_15 : f32 to vector<8x256xf32>
    %35 = arith.select %33, %34, %21 : vector<8x256xi1>, vector<8x256xf32>
    %cst_16 = arith.constant 0xFF800000 : f32
    %36 = vector.broadcast %cst_16 : f32 to vector<8x256xf32>
    %37 = arith.select %33, %36, %23 : vector<8x256xi1>, vector<8x256xf32>
    %c2_i32 = arith.constant 2 : i32
    %cst_17 = arith.constant dense<0xFF800000> : vector<8xf32>
    %38 = vector.multi_reduction <maximumf>, %37, %cst_17 [1] : vector<8x256xf32> to vector<8xf32>
    %39 = vector.shape_cast %38 : vector<8xf32> to vector<8x1xf32>
    %40 = vector.broadcast %39 : vector<8x1xf32> to vector<8x256xf32>
    %41 = arith.cmpf oeq, %37, %40 : vector<8x256xf32>
    %c256_i32_18 = arith.constant 256 : i32
    %42 = vector.broadcast %c256_i32_18 : i32 to vector<8x256xi32>
    %43 = arith.select %41, %8, %42 : vector<8x256xi1>, vector<8x256xi32>
    %cst_19 = arith.constant dense<2147483647> : vector<8xi32>
    %44 = vector.multi_reduction <minsi>, %43, %cst_19 [1] : vector<8x256xi32> to vector<8xi32>
    %45 = vector.shape_cast %44 : vector<8xi32> to vector<8x1xi32>
    %46 = vector.broadcast %45 : vector<8x1xi32> to vector<8x256xi32>
    %47 = arith.cmpi eq, %8, %46 : vector<8x256xi32>
    %cst_20 = arith.constant 1.000000e+00 : f32
    %48 = vector.broadcast %cst_20 : f32 to vector<8x256xf32>
    %49 = arith.select %47, %48, %35 : vector<8x256xi1>, vector<8x256xf32>
    %cst_21 = arith.constant 0xFF800000 : f32
    %50 = vector.broadcast %cst_21 : f32 to vector<8x256xf32>
    %51 = arith.select %47, %50, %37 : vector<8x256xi1>, vector<8x256xf32>
    %c3_i32 = arith.constant 3 : i32
    %cst_22 = arith.constant dense<0xFF800000> : vector<8xf32>
    %52 = vector.multi_reduction <maximumf>, %51, %cst_22 [1] : vector<8x256xf32> to vector<8xf32>
    %53 = vector.shape_cast %52 : vector<8xf32> to vector<8x1xf32>
    %54 = vector.broadcast %53 : vector<8x1xf32> to vector<8x256xf32>
    %55 = arith.cmpf oeq, %51, %54 : vector<8x256xf32>
    %c256_i32_23 = arith.constant 256 : i32
    %56 = vector.broadcast %c256_i32_23 : i32 to vector<8x256xi32>
    %57 = arith.select %55, %8, %56 : vector<8x256xi1>, vector<8x256xi32>
    %cst_24 = arith.constant dense<2147483647> : vector<8xi32>
    %58 = vector.multi_reduction <minsi>, %57, %cst_24 [1] : vector<8x256xi32> to vector<8xi32>
    %59 = vector.shape_cast %58 : vector<8xi32> to vector<8x1xi32>
    %60 = vector.broadcast %59 : vector<8x1xi32> to vector<8x256xi32>
    %61 = arith.cmpi eq, %8, %60 : vector<8x256xi32>
    %cst_25 = arith.constant 1.000000e+00 : f32
    %62 = vector.broadcast %cst_25 : f32 to vector<8x256xf32>
    %63 = arith.select %61, %62, %49 : vector<8x256xi1>, vector<8x256xf32>
    %cst_26 = arith.constant 0xFF800000 : f32
    %64 = vector.broadcast %cst_26 : f32 to vector<8x256xf32>
    %65 = arith.select %61, %64, %51 : vector<8x256xi1>, vector<8x256xf32>
    %c4_i32 = arith.constant 4 : i32
    %cst_27 = arith.constant dense<0xFF800000> : vector<8xf32>
    %66 = vector.multi_reduction <maximumf>, %65, %cst_27 [1] : vector<8x256xf32> to vector<8xf32>
    %67 = vector.shape_cast %66 : vector<8xf32> to vector<8x1xf32>
    %68 = vector.broadcast %67 : vector<8x1xf32> to vector<8x256xf32>
    %69 = arith.cmpf oeq, %65, %68 : vector<8x256xf32>
    %c256_i32_28 = arith.constant 256 : i32
    %70 = vector.broadcast %c256_i32_28 : i32 to vector<8x256xi32>
    %71 = arith.select %69, %8, %70 : vector<8x256xi1>, vector<8x256xi32>
    %cst_29 = arith.constant dense<2147483647> : vector<8xi32>
    %72 = vector.multi_reduction <minsi>, %71, %cst_29 [1] : vector<8x256xi32> to vector<8xi32>
    %73 = vector.shape_cast %72 : vector<8xi32> to vector<8x1xi32>
    %74 = vector.broadcast %73 : vector<8x1xi32> to vector<8x256xi32>
    %75 = arith.cmpi eq, %8, %74 : vector<8x256xi32>
    %cst_30 = arith.constant 1.000000e+00 : f32
    %76 = vector.broadcast %cst_30 : f32 to vector<8x256xf32>
    %77 = arith.select %75, %76, %63 : vector<8x256xi1>, vector<8x256xf32>
    %cst_31 = arith.constant 0xFF800000 : f32
    %78 = vector.broadcast %cst_31 : f32 to vector<8x256xf32>
    %79 = arith.select %75, %78, %65 : vector<8x256xi1>, vector<8x256xf32>
    %c5_i32 = arith.constant 5 : i32
    %cst_32 = arith.constant dense<0xFF800000> : vector<8xf32>
    %80 = vector.multi_reduction <maximumf>, %79, %cst_32 [1] : vector<8x256xf32> to vector<8xf32>
    %81 = vector.shape_cast %80 : vector<8xf32> to vector<8x1xf32>
    %82 = vector.broadcast %81 : vector<8x1xf32> to vector<8x256xf32>
    %83 = arith.cmpf oeq, %79, %82 : vector<8x256xf32>
    %c256_i32_33 = arith.constant 256 : i32
    %84 = vector.broadcast %c256_i32_33 : i32 to vector<8x256xi32>
    %85 = arith.select %83, %8, %84 : vector<8x256xi1>, vector<8x256xi32>
    %cst_34 = arith.constant dense<2147483647> : vector<8xi32>
    %86 = vector.multi_reduction <minsi>, %85, %cst_34 [1] : vector<8x256xi32> to vector<8xi32>
    %87 = vector.shape_cast %86 : vector<8xi32> to vector<8x1xi32>
    %88 = vector.broadcast %87 : vector<8x1xi32> to vector<8x256xi32>
    %89 = arith.cmpi eq, %8, %88 : vector<8x256xi32>
    %cst_35 = arith.constant 1.000000e+00 : f32
    %90 = vector.broadcast %cst_35 : f32 to vector<8x256xf32>
    %91 = arith.select %89, %90, %77 : vector<8x256xi1>, vector<8x256xf32>
    %cst_36 = arith.constant 0xFF800000 : f32
    %92 = vector.broadcast %cst_36 : f32 to vector<8x256xf32>
    %93 = arith.select %89, %92, %79 : vector<8x256xi1>, vector<8x256xf32>
    %c6_i32 = arith.constant 6 : i32
    %cst_37 = arith.constant dense<0xFF800000> : vector<8xf32>
    %94 = vector.multi_reduction <maximumf>, %93, %cst_37 [1] : vector<8x256xf32> to vector<8xf32>
    %95 = vector.shape_cast %94 : vector<8xf32> to vector<8x1xf32>
    %96 = vector.broadcast %95 : vector<8x1xf32> to vector<8x256xf32>
    %97 = arith.cmpf oeq, %93, %96 : vector<8x256xf32>
    %c256_i32_38 = arith.constant 256 : i32
    %98 = vector.broadcast %c256_i32_38 : i32 to vector<8x256xi32>
    %99 = arith.select %97, %8, %98 : vector<8x256xi1>, vector<8x256xi32>
    %cst_39 = arith.constant dense<2147483647> : vector<8xi32>
    %100 = vector.multi_reduction <minsi>, %99, %cst_39 [1] : vector<8x256xi32> to vector<8xi32>
    %101 = vector.shape_cast %100 : vector<8xi32> to vector<8x1xi32>
    %102 = vector.broadcast %101 : vector<8x1xi32> to vector<8x256xi32>
    %103 = arith.cmpi eq, %8, %102 : vector<8x256xi32>
    %cst_40 = arith.constant 1.000000e+00 : f32
    %104 = vector.broadcast %cst_40 : f32 to vector<8x256xf32>
    %105 = arith.select %103, %104, %91 : vector<8x256xi1>, vector<8x256xf32>
    %cst_41 = arith.constant 0xFF800000 : f32
    %106 = vector.broadcast %cst_41 : f32 to vector<8x256xf32>
    %107 = arith.select %103, %106, %93 : vector<8x256xi1>, vector<8x256xf32>
    %c7_i32 = arith.constant 7 : i32
    %cst_42 = arith.constant dense<0xFF800000> : vector<8xf32>
    %108 = vector.multi_reduction <maximumf>, %107, %cst_42 [1] : vector<8x256xf32> to vector<8xf32>
    %109 = vector.shape_cast %108 : vector<8xf32> to vector<8x1xf32>
    %110 = vector.broadcast %109 : vector<8x1xf32> to vector<8x256xf32>
    %111 = arith.cmpf oeq, %107, %110 : vector<8x256xf32>
    %c256_i32_43 = arith.constant 256 : i32
    %112 = vector.broadcast %c256_i32_43 : i32 to vector<8x256xi32>
    %113 = arith.select %111, %8, %112 : vector<8x256xi1>, vector<8x256xi32>
    %cst_44 = arith.constant dense<2147483647> : vector<8xi32>
    %114 = vector.multi_reduction <minsi>, %113, %cst_44 [1] : vector<8x256xi32> to vector<8xi32>
    %115 = vector.shape_cast %114 : vector<8xi32> to vector<8x1xi32>
    %116 = vector.broadcast %115 : vector<8x1xi32> to vector<8x256xi32>
    %117 = arith.cmpi eq, %8, %116 : vector<8x256xi32>
    %cst_45 = arith.constant 1.000000e+00 : f32
    %118 = vector.broadcast %cst_45 : f32 to vector<8x256xf32>
    %119 = arith.select %117, %118, %105 : vector<8x256xi1>, vector<8x256xf32>
    %cst_46 = arith.constant 0xFF800000 : f32
    %120 = vector.broadcast %cst_46 : f32 to vector<8x256xf32>
    %121 = arith.select %117, %120, %107 : vector<8x256xi1>, vector<8x256xf32>
    %cst_47 = arith.constant dense<0.000000e+00> : vector<4x256xf32>
    %122 = tpu.matmul %1, %119, %cst_47 {dimension_numbers = #tpu.dot_dimension_numbers<[1], [0], [0], [1], [0, 0, 1, 1], [], []>} : vector<4x8xf32>, vector<8x256xf32>, vector<4x256xf32> -> vector<4x256xf32>
    %c0_48 = arith.constant 0 : index
    %c0_49 = arith.constant 0 : index
    %c0_50 = arith.constant 0 : index
    %123 = vector.load %arg1[%c0_48, %c0_49, %c0_50] : memref<1x4x256xf32, #tpu.memory_space<vmem>>, vector<1x4x256xf32>
    %124 = vector.shape_cast %123 : vector<1x4x256xf32> to vector<4x256xf32>
    %125 = arith.mulf %124, %122 : vector<4x256xf32>
    %c0_51 = arith.constant 0 : index
    %c0_52 = arith.constant 0 : index
    %c0_53 = arith.constant 0 : index
    %126 = vector.load %arg4[%c0_51, %c0_52, %c0_53] : memref<1x4x256xf32, #tpu.memory_space<vmem>>, vector<1x4x256xf32>
    %127 = vector.shape_cast %126 : vector<1x4x256xf32> to vector<4x256xf32>
    %128 = vector.shape_cast %125 : vector<4x256xf32> to vector<1x4x256xf32>
    tpu.vector_store %arg4[%c0_51, %c0_52, %c0_53], %128 {strides = array<i32>} : memref<1x4x256xf32, #tpu.memory_space<vmem>>, vector<1x4x256xf32>,
    return
  }
  func.func @transform_0(%arg0: i32) -> (i32, i32, i32) {
    %c0_i32 = arith.constant 0 : i32
    %c0_i32_0 = arith.constant 0 : i32
    %c0_i32_1 = arith.constant 0 : i32
    return %arg0, %c0_i32, %c0_i32_0 : i32, i32, i32
  }
  func.func @transform_1(%arg0: i32) -> (i32, i32) {
    %c0_i32 = arith.constant 0 : i32
    %c0_i32_0 = arith.constant 0 : i32
    %c0_i32_1 = arith.constant 0 : i32
    return %c0_i32, %c0_i32_0 : i32, i32
  }
  func.func @transform_2(%arg0: i32) -> (i32, i32) {
    %c0_i32 = arith.constant 0 : i32
    %c0_i32_0 = arith.constant 0 : i32
    %c0_i32_1 = arith.constant 0 : i32
    return %c0_i32, %c0_i32_0 : i32, i32
  }
  func.func @transform_3(%arg0: i32) -> (i32, i32, i32) {
    %c0_i32 = arith.constant 0 : i32
    %c0_i32_0 = arith.constant 0 : i32
    %c0_i32_1 = arith.constant 0 : i32
    return %arg0, %c0_i32, %c0_i32_0 : i32, i32, i32
  }
}

</mosaic_0001>

<bundles_post_ra>
// kernel: tpu_custom_call.1
= control target key start
LH: loop header
LB: loop body
LE: loop exit
PB: predicated region body
PF: predicated region fallthrough
CT: control target
= control target key end

     0   :  { %8 = vsyncpa [#allocation3], 0  ;;  %s995_s0 = inlined_call_operand.hbm [shape: f32[2,4,256], index: 0, kind: input, shape index: {}]   ;;  %s996_s1 = inlined_call_operand.vmem [shape: f32[8,4], index: 1, kind: input, shape index: {}]   ;;  %s997_s2 = inlined_call_operand.vmem [shape: f32[4,8], index: 2, kind: input, shape index: {}]   ;;  %s998_s3 = inlined_call_operand.hbm [shape: f32[2,4,256], index: 3, kind: output, shape index: {}]  }
   0x1   :  { %10 = vsyncpa [#allocation3 + $0x1], 0 }
   0x2   :  { %11 = vsyncpa [#allocation4], 0 }
   0x3   :  { %13 = vsyncpa [#allocation4 + $0x1], 0  ;;  %s805_s12 = smov 0   ;;  %s807_s13 = smov 0  }
   0x4   :  { %s809_s14 = smov 0   ;;  %s811_s15 = smov 0  }
   0x5 LB: > { %s826_s16 = sadd.s32 4294967295, %s782_s15   ;;  %s617_s17 = sadd.s32 4294967294, %s782_s15   ;;  %s782_s15 = sphi %s811_s15, %s1008_s15   ;;  %s778_s14 = sphi %s809_s14, %s1007_s14   ;;  %s774_s13 = sphi %s807_s13, %s1006_s13   ;;  %s770_s12 = sphi %s805_s12, %s1005_s12  }
   0x6   : > { %s830_s18 = sadd.s32 1, %s782_s15   ;;  %s26_s19 = sadd.s32 1, %s778_s14 }
   0x7   : > { %s23_s20 = ssub.s32 %s782_s15, %s830_s18  ;;  %p33_p0 = scmp.ne.s32.totalorder %s778_s14, %s774_s13 }
   0x8   : > { %p24_p1 = scmp.eq.s32.totalorder %s23_s20, 0  ;;  %p34_p2 = scmp.eq.s32.totalorder %s782_s15, 0 }
   0x9   : > { %p39_p3 = scmp.ne.s32.totalorder %s774_s13, %s770_s12  ;;  %p40_p4 = scmp.eq.s32.totalorder %s826_s16, 0 }
   0xa   : > { %s842_s21 = scalar_select %p24_p1, %s778_s14, %s26_s19  }
   0xb   : > { %p844_p5 = por %p34_p2, %p33_p0  ;;  %p848_p6 = por %p40_p4, %p39_p3 }
   0xc   : > { %p105_p7 = scmp.eq.s32.totalorder %s826_s16, 1  ;;  %p111_p8 = scmp.eq.s32.totalorder %s617_s17, 1 }
   0xd   : > { %p651_p10 = scmp.lt.s32.totalorder %s782_s15, 2  ;;  %s137_s26 = sand.u32 1, %s778_s14  }
   0xe   : > { %p855_p11 = por %p105_p7, %p33_p0  ;;  %p859_p12 = por %p111_p8, %p39_p3 }
   0xf   : > { %s637_s27 = sshll.u32 %s782_s15, 3  ;;  %s620_s28 = sshll.u32 %s137_s26, 3 }
  0x10   : > { %s146_s4 = scalar_lea.hbm %s995_s0, %s637_s27  ;;  %s141_s6 = scalar_lea.vmem [#allocation2], %s620_s28 }
  0x11   : > { %s148_s5 = sshll.u32 %s146_s4, 4  ;;  %s150_s7 = sshll.u32 %s141_s6, 4  ;;  %s149_s5 = int_to_ptr.hbm [resolvable:$true] %s148_s5  ;;  %s151_s7 = int_to_ptr.vmem [resolvable:$true] %s150_s7 }
  0x12   : > { %p870_p13 = pnand %p651_p10, %p844_p5  ;;  %p623_p0 = scmp.ge.s32.totalorder %s782_s15, 1 }
  0x13   : > { %p155_p1 = scmp.lt.s32.totalorder %s782_s15, 3  ;;  %s138_s9 = scalar_lea.sflag [#allocation3], %s137_s26 }
  0x14   : > { %s686_s10 = sshra.s32 %s149_s5, 4  ;;  %p690_p3 = pneg %p870_p13  ;;  %s687_s10 = int_to_ptr.hbm [resolvable:$true] %s686_s10 }
  0x15   : > { %s688_s11 = scalar_lea.hbm %s687_s10, 8  ;;  %s693_s20 = scalar_lea.hbm %s995_s0, 16 }
  0x16   : > { %p689_p2 = scmp.ne.s32.totalorder %s687_s10, %s688_s11  ;;  %p694_p5 = scmp.lt.s32.totalorder %s687_s10, %s995_s0 }
  0x17   : > { %p695_p8 = scmp.lt.s32.totalorder %s693_s20, %s688_s11 }
  0x18   : > { %p691_p4 = pnand %p690_p3, %p689_p2 }
  0x19   : > { %p696_p10 = por %p695_p8, %p694_p5 }
  0x1a   : > { %p692_p7 = pneg %p691_p4 }
  0x1c   : > { %p697_p9 = pnand %p696_p10, %p692_p7 }
  0x1e   : > { %700 = shalt.err (!%p697_p9)
}
  0x1f   : > { %646 = dma.hbm_to_vmem [thread:$0]  (!%p870_p13), %s149_s5, 128, %s151_s7, %s138_s9  }
  0x20   : > { %p156_p2 = pnand %p623_p0, %p155_p1 }
  0x21   : > { %s891_s26 = sand.u32 (!%p156_p2), 1, %s774_s13  }
  0x22   : > { %159 = sbr.rel (%p156_p2) target bundleno = 3249 (0xcb1), region = 32  ;;  %s624_s28 = sshll.u32 (!%p156_p2), %s891_s26, 3 }
  0x23   : > { %s162_s29 = scalar_lea.sflag (!%p156_p2), [#allocation3], %s891_s26  ;;  %s165_s30 = scalar_lea.vmem (!%p156_p2), [#allocation2], %s624_s28 }
  0x27   : > { %761 = dma.done.wait (%p848_p6), %s162_s29, 128  }
  0x28   : > { %763 = vsyncadd (%p848_p6), %s162_s29, 4294967168  ;;  %v901_v0 = vld [vmem:[%s165_s30] sm:$0xff]  ;;  %vm201_vm0 = vcmask 1043456   ;;  %v189_v2 = vld [vmem:[%s996_s1] sm:$0xff]  ;;  %vm197_vm1 = vcmask 31744   ;;  %v246_v10 = vlaneseq  ;;  %v784_v46 = vmov 0.0  }
  0x29   : > { %v192_v1 = vmul.f32 %v901_v0, %v901_v0  ;;  %s638_s7 = sshll.u32 %s826_s16, 3  ;;  %s188_s11 = scalar_lea.vmem [#allocation5], %s624_s28 }
  0x2a   : > { %v910_v11 = vand.u32 127, %v246_v10  ;;  %s542_s10 = scalar_lea.hbm %s998_s3, %s638_s7  ;;  %s544_s17 = sshll.u32 %s188_s11, 4  ;;  %s545_s17 = int_to_ptr.vmem [resolvable:$true] %s544_s17 }
  0x2b   : > { %194 = vst [vmem:[#allocation1] ss:$2 sm:$0xff] %v192_v1  ;;  %s546_s19 = sshll.u32 %s542_s10, 4  ;;  %s531_s16 = scalar_lea.sflag [#allocation4], %s891_s26  ;;  %s547_s19 = int_to_ptr.hbm [resolvable:$true] %s546_s19 }
  0x2c   : > { %v913_v12 = vadd.s32 128, %v910_v11  ;;  %s730_s20 = sshra.s32 %s547_s19, 4  ;;  %s736_s28 = scalar_lea.hbm %s998_s3, 16  ;;  %s731_s20 = int_to_ptr.hbm [resolvable:$true] %s730_s20 }
  0x2d   : > { %s732_s22 = scalar_lea.hbm %s731_s20, 8  ;;  %p737_p0 = scmp.lt.s32.totalorder %s731_s20, %s998_s3 }
  0x2e   : > { %p733_p6 = scmp.ne.s32.totalorder %s731_s20, %s732_s22  ;;  %p738_p1 = scmp.lt.s32.totalorder %s736_s28, %s732_s22 }
  0x30   : > { %p734_p9 = pnand %p733_p6, %p855_p11  ;;  %p739_p3 = por %p738_p1, %p737_p0 }
  0x32   : > { %v195_v3 = vld.sshfl [vmem:[#allocation1] sm:$0xff pattern:$0x75316420]  ;;  %v196_v4 = vld.sshfl [vmem:[#allocation1 + $0x8] sm:$0xff pattern:$0x75316420]  ;;  %p735_p13 = pneg %p734_p9 }
  0x33   : > { %626 = vmatpush.msk.msra.mxu0 %vm201_vm0, %v195_v3  ;;  %628 = vmatpush.msk.msra.mxu1 %vm201_vm0, %v196_v4 }
  0x34   : > { %627 = vmatmul.msk.f32.vlgmr.msra.gmra.mxu0 %vm197_vm1, %v189_v2  ;;  %629 = vmatmul.msk.f32.vlgmr.msra.gmra.mxu1 %vm197_vm1, %v189_v2  ;;  %p740_p4 = pnand %p739_p3, %p735_p13 }
  0xb1   : > { %v223_v5 = vpop.f32.mrf.mxu0  ;;  %v243_v6 = vpop.f32.mrf.mxu1 }
  0xb2   : > { %v224_v7 = vadd.f32 1e-09, %v223_v5  ;;  %v244_v8 = vadd.f32 1e-09, %v243_v6 }
  0xb4   : > { %v249_v9 = vmax.f32 %v224_v7, %v244_v8 }
  0xb6   : > { %250 = vmax.xlane.f32.xlu0 %v249_v9 }
 0x129   : > { %v251_v13 = vpop.xlane.xlu0 %250 }
 0x12a   : > { %vm252_vm2 = vcmp.eq.f32.partialorder %v224_v7, %v251_v13  ;;  %vm253_vm3 = vcmp.eq.f32.partialorder %v244_v8, %v251_v13 }
 0x12b   : > { %v254_v14 = vsel %vm252_vm2, %v910_v11, 256  ;;  %v255_v15 = vsel %vm253_vm3, %v913_v12, 256 }
 0x12c   : > { %vm256_vm4 = vcmp.lt.s32.totalorder %v254_v14, %v255_v15 }
 0x12d   : > { %v257_v16 = vsel %vm256_vm4, %v254_v14, %v255_v15 }
 0x12e   : > { %v259_v17 = vshra.s32 %v257_v16, 16  ;;  %v258_v19 = vand.u32 65535, %v257_v16 }
 0x130   : > { %v261_v18 = vcvt.s32.f32 %v259_v17  ;;  %v260_v21 = vcvt.s32.f32 %v258_v19 }
 0x132   : > { %262 = vmin.xlane.f32.xlu0 %v261_v18 }
 0x1a5   : > { %v263_v20 = vpop.xlane.xlu0 %262 }
 0x1a6   : > { %vm264_vm5 = vcmp.eq.f32.partialorder %v261_v18, %v263_v20  ;;  %v269_v23 = vcvt.f32.s32 %v263_v20 }
 0x1a7   : > { %v265_v22 = vsel %vm264_vm5, %v260_v21, inf }
 0x1a8   : > { %266 = vmin.xlane.f32.xlu1 %v265_v22  ;;  %v270_v25 = vshll.u32 %v269_v23, 16 }
 0x21b   : > { %v267_v24 = vpop.xlane.xlu1 %266 }
 0x21c   : > { %v268_v26 = vcvt.f32.s32 %v267_v24 }
 0x21e   : > { %v271_v27 = vadd.s32 %v270_v25, %v268_v26 }
 0x220   : > { %vm272_vm6 = vcmp.eq.s32.totalorder %v910_v11, %v271_v27  ;;  %vm273_vm7 = vcmp.eq.s32.totalorder %v913_v12, %v271_v27 }
 0x221   : > { %v276_v28 = vsel %vm272_vm6, -inf, %v224_v7  ;;  %v277_v29 = vsel %vm273_vm7, -inf, %v244_v8  ;;  %v274_v47 = vsel %vm272_vm6, 1.0, %v784_v46  ;;  %v275_v48 = vsel %vm273_vm7, 1.0, %v784_v46 }
 0x222   : > { %v278_v30 = vmax.f32 %v276_v28, %v277_v29 }
 0x224   : > { %279 = vmax.xlane.f32.xlu1 %v278_v30 }
 0x297   : > { %v280_v31 = vpop.xlane.xlu1 %279 }
 0x298   : > { %vm281_vm8 = vcmp.eq.f32.partialorder %v276_v28, %v280_v31  ;;  %vm282_vm9 = vcmp.eq.f32.partialorder %v277_v29, %v280_v31 }
 0x299   : > { %v283_v32 = vsel %vm281_vm8, %v910_v11, 256  ;;  %v284_v33 = vsel %vm282_vm9, %v913_v12, 256 }
 0x29a   : > { %vm285_vm10 = vcmp.lt.s32.totalorder %v283_v32, %v284_v33 }
 0x29b   : > { %v286_v34 = vsel %vm285_vm10, %v283_v32, %v284_v33 }
 0x29c   : > { %v288_v35 = vshra.s32 %v286_v34, 16  ;;  %v287_v37 = vand.u32 65535, %v286_v34 }
 0x29e   : > { %v290_v36 = vcvt.s32.f32 %v288_v35  ;;  %v289_v39 = vcvt.s32.f32 %v287_v37 }
 0x2a0   : > { %291 = vmin.xlane.f32.xlu2 %v290_v36 }
 0x313   : > { %v292_v38 = vpop.xlane.xlu2 %291 }
 0x314   : > { %vm293_vm11 = vcmp.eq.f32.partialorder %v290_v36, %v292_v38  ;;  %v298_v41 = vcvt.f32.s32 %v292_v38 }
 0x315   : > { %v294_v40 = vsel %vm293_vm11, %v289_v39, inf }
 0x316   : > { %295 = vmin.xlane.f32.xlu2 %v294_v40  ;;  %v299_v43 = vshll.u32 %v298_v41, 16 }
 0x389   : > { %v296_v42 = vpop.xlane.xlu2 %295 }
 0x38a   : > { %v297_v44 = vcvt.f32.s32 %v296_v42 }
 0x38c   : > { %v300_v45 = vadd.s32 %v299_v43, %v297_v44 }
 0x38e   : > { %vm301_vm12 = vcmp.eq.s32.totalorder %v910_v11, %v300_v45  ;;  %vm302_vm13 = vcmp.eq.s32.totalorder %v913_v12, %v300_v45 }
 0x38f   : > { %v303_v49 = vsel %vm301_vm12, 1.0, %v274_v47  ;;  %v304_v50 = vsel %vm302_vm13, 1.0, %v275_v48  ;;  %v305_v51 = vsel %vm301_vm12, -inf, %v276_v28  ;;  %v306_v52 = vsel %vm302_vm13, -inf, %v277_v29 }
 0x390   : > { %v307_v53 = vmax.f32 %v305_v51, %v306_v52 }
 0x392   : > { %308 = vmax.xlane.f32.xlu0 %v307_v53 }
 0x405   : > { %v309_v54 = vpop.xlane.xlu0 %308 }
 0x406   : > { %vm310_vm14 = vcmp.eq.f32.partialorder %v305_v51, %v309_v54  ;;  %vm311_vm15 = vcmp.eq.f32.partialorder %v306_v52, %v309_v54 }
 0x407   : > { %v312_v55 = vsel %vm310_vm14, %v910_v11, 256  ;;  %v313_v56 = vsel %vm311_vm15, %v913_v12, 256 }
 0x408   : > { %vm314_vm1 = vcmp.lt.s32.totalorder %v312_v55, %v313_v56 }
 0x409   : > { %v315_v57 = vsel %vm314_vm1, %v312_v55, %v313_v56 }
 0x40a   : > { %v317_v58 = vshra.s32 %v315_v57, 16  ;;  %v316_v60 = vand.u32 65535, %v315_v57 }
 0x40c   : > { %v319_v59 = vcvt.s32.f32 %v317_v58  ;;  %v318_v62 = vcvt.s32.f32 %v316_v60 }
 0x40e   : > { %320 = vmin.xlane.f32.xlu1 %v319_v59 }
 0x481   : > { %v321_v61 = vpop.xlane.xlu1 %320 }
 0x482   : > { %vm322_vm2 = vcmp.eq.f32.partialorder %v319_v59, %v321_v61  ;;  %v327_v1 = vcvt.f32.s32 %v321_v61 }
 0x483   : > { %v323_v63 = vsel %vm322_vm2, %v318_v62, inf }
 0x484   : > { %324 = vmin.xlane.f32.xlu2 %v323_v63  ;;  %v328_v3 = vshll.u32 %v327_v1, 16 }
 0x4f7   : > { %v325_v2 = vpop.xlane.xlu2 %324 }
 0x4f8   : > { %v326_v4 = vcvt.f32.s32 %v325_v2 }
 0x4fa   : > { %v329_v5 = vadd.s32 %v328_v3, %v326_v4 }
 0x4fc   : > { %vm330_vm3 = vcmp.eq.s32.totalorder %v910_v11, %v329_v5  ;;  %vm331_vm4 = vcmp.eq.s32.totalorder %v913_v12, %v329_v5 }
 0x4fd   : > { %v334_v6 = vsel %vm330_vm3, -inf, %v305_v51  ;;  %v335_v7 = vsel %vm331_vm4, -inf, %v306_v52  ;;  %v332_v8 = vsel %vm330_vm3, 1.0, %v303_v49  ;;  %v333_v9 = vsel %vm331_vm4, 1.0, %v304_v50 }
 0x4fe   : > { %v336_v10 = vmax.f32 %v334_v6, %v335_v7 }
 0x500   : > { %337 = vmax.xlane.f32.xlu0 %v336_v10 }
 0x573   : > { %v338_v13 = vpop.xlane.xlu0 %337 }
 0x574   : > { %vm339_vm5 = vcmp.eq.f32.partialorder %v334_v6, %v338_v13  ;;  %vm340_vm6 = vcmp.eq.f32.partialorder %v335_v7, %v338_v13 }
 0x575   : > { %v341_v14 = vsel %vm339_vm5, %v910_v11, 256  ;;  %v342_v15 = vsel %vm340_vm6, %v913_v12, 256 }
 0x576   : > { %vm343_vm7 = vcmp.lt.s32.totalorder %v341_v14, %v342_v15 }
 0x577   : > { %v344_v16 = vsel %vm343_vm7, %v341_v14, %v342_v15 }
 0x578   : > { %v346_v17 = vshra.s32 %v344_v16, 16  ;;  %v345_v19 = vand.u32 65535, %v344_v16 }
 0x57a   : > { %v348_v18 = vcvt.s32.f32 %v346_v17  ;;  %v347_v21 = vcvt.s32.f32 %v345_v19 }
 0x57c   : > { %349 = vmin.xlane.f32.xlu1 %v348_v18 }
 0x5ef   : > { %v350_v20 = vpop.xlane.xlu1 %349 }
 0x5f0   : > { %vm351_vm8 = vcmp.eq.f32.partialorder %v348_v18, %v350_v20  ;;  %v356_v23 = vcvt.f32.s32 %v350_v20 }
 0x5f1   : > { %v352_v22 = vsel %vm351_vm8, %v347_v21, inf }
 0x5f2   : > { %353 = vmin.xlane.f32.xlu2 %v352_v22  ;;  %v357_v25 = vshll.u32 %v356_v23, 16 }
 0x665   : > { %v354_v24 = vpop.xlane.xlu2 %353 }
 0x666   : > { %v355_v26 = vcvt.f32.s32 %v354_v24 }
 0x668   : > { %v358_v27 = vadd.s32 %v357_v25, %v355_v26 }
 0x66a   : > { %vm359_vm9 = vcmp.eq.s32.totalorder %v910_v11, %v358_v27  ;;  %vm360_vm10 = vcmp.eq.s32.totalorder %v913_v12, %v358_v27 }
 0x66b   : > { %v363_v28 = vsel %vm359_vm9, -inf, %v334_v6  ;;  %v364_v29 = vsel %vm360_vm10, -inf, %v335_v7  ;;  %v361_v30 = vsel %vm359_vm9, 1.0, %v332_v8  ;;  %v362_v31 = vsel %vm360_vm10, 1.0, %v333_v9 }
 0x66c   : > { %v365_v32 = vmax.f32 %v363_v28, %v364_v29 }
 0x66e   : > { %366 = vmax.xlane.f32.xlu0 %v365_v32 }
 0x6e1   : > { %v367_v33 = vpop.xlane.xlu0 %366 }
 0x6e2   : > { %vm368_vm11 = vcmp.eq.f32.partialorder %v363_v28, %v367_v33  ;;  %vm369_vm12 = vcmp.eq.f32.partialorder %v364_v29, %v367_v33 }
 0x6e3   : > { %v370_v34 = vsel %vm368_vm11, %v910_v11, 256  ;;  %v371_v35 = vsel %vm369_vm12, %v913_v12, 256 }
 0x6e4   : > { %vm372_vm13 = vcmp.lt.s32.totalorder %v370_v34, %v371_v35 }
 0x6e5   : > { %v373_v36 = vsel %vm372_vm13, %v370_v34, %v371_v35 }
 0x6e6   : > { %v375_v37 = vshra.s32 %v373_v36, 16  ;;  %v374_v39 = vand.u32 65535, %v373_v36 }
 0x6e8   : > { %v377_v38 = vcvt.s32.f32 %v375_v37  ;;  %v376_v41 = vcvt.s32.f32 %v374_v39 }
 0x6ea   : > { %378 = vmin.xlane.f32.xlu1 %v377_v38 }
 0x75d   : > { %v379_v40 = vpop.xlane.xlu1 %378 }
 0x75e   : > { %vm380_vm14 = vcmp.eq.f32.partialorder %v377_v38, %v379_v40  ;;  %v385_v43 = vcvt.f32.s32 %v379_v40 }
 0x75f   : > { %v381_v42 = vsel %vm380_vm14, %v376_v41, inf }
 0x760   : > { %382 = vmin.xlane.f32.xlu2 %v381_v42  ;;  %v386_v45 = vshll.u32 %v385_v43, 16 }
 0x7d3   : > { %v383_v44 = vpop.xlane.xlu2 %382 }
 0x7d4   : > { %v384_v46 = vcvt.f32.s32 %v383_v44 }
 0x7d6   : > { %v387_v47 = vadd.s32 %v386_v45, %v384_v46 }
 0x7d8   : > { %vm388_vm15 = vcmp.eq.s32.totalorder %v910_v11, %v387_v47  ;;  %vm389_vm1 = vcmp.eq.s32.totalorder %v913_v12, %v387_v47  ;;  %v190_v47 = vld [vmem:[%s997_s2] sm:$0xf] }
 0x7d9   : > { %v392_v48 = vsel %vm388_vm15, -inf, %v363_v28  ;;  %v393_v49 = vsel %vm389_vm1, -inf, %v364_v29  ;;  %v390_v50 = vsel %vm388_vm15, 1.0, %v361_v30  ;;  %v391_v51 = vsel %vm389_vm1, 1.0, %v362_v31 }
 0x7da   : > { %v394_v52 = vmax.f32 %v392_v48, %v393_v49 }
 0x7dc   : > { %395 = vmax.xlane.f32.xlu0 %v394_v52 }
 0x84f   : > { %v396_v53 = vpop.xlane.xlu0 %395 }
 0x850   : > { %vm397_vm2 = vcmp.eq.f32.partialorder %v392_v48, %v396_v53  ;;  %vm398_vm3 = vcmp.eq.f32.partialorder %v393_v49, %v396_v53 }
 0x851   : > { %v399_v54 = vsel %vm397_vm2, %v910_v11, 256  ;;  %v400_v55 = vsel %vm398_vm3, %v913_v12, 256 }
 0x852   : > { %vm401_vm4 = vcmp.lt.s32.totalorder %v399_v54, %v400_v55 }
 0x853   : > { %v402_v56 = vsel %vm401_vm4, %v399_v54, %v400_v55 }
 0x854   : > { %v404_v57 = vshra.s32 %v402_v56, 16  ;;  %v403_v59 = vand.u32 65535, %v402_v56 }
 0x856   : > { %v406_v58 = vcvt.s32.f32 %v404_v57  ;;  %v405_v61 = vcvt.s32.f32 %v403_v59 }
 0x858   : > { %407 = vmin.xlane.f32.xlu1 %v406_v58 }
 0x8cb   : > { %v408_v60 = vpop.xlane.xlu1 %407 }
 0x8cc   : > { %vm409_vm5 = vcmp.eq.f32.partialorder %v406_v58, %v408_v60  ;;  %v414_v63 = vcvt.f32.s32 %v408_v60 }
 0x8cd   : > { %v410_v62 = vsel %vm409_vm5, %v405_v61, inf  ;;  %vm479_vm5 = vcmask 64512  }
 0x8ce   : > { %411 = vmin.xlane.f32.xlu2 %v410_v62  ;;  %v415_v2 = vshll.u32 %v414_v63, 16 }
 0x941   : > { %v412_v1 = vpop.xlane.xlu2 %411 }
 0x942   : > { %v413_v3 = vcvt.f32.s32 %v412_v1 }
 0x944   : > { %v416_v4 = vadd.s32 %v415_v2, %v413_v3 }
 0x946   : > { %vm417_vm6 = vcmp.eq.s32.totalorder %v910_v11, %v416_v4  ;;  %vm418_vm7 = vcmp.eq.s32.totalorder %v913_v12, %v416_v4 }
 0x947   : > { %v421_v5 = vsel %vm417_vm6, -inf, %v392_v48  ;;  %v422_v6 = vsel %vm418_vm7, -inf, %v393_v49  ;;  %v419_v7 = vsel %vm417_vm6, 1.0, %v390_v50  ;;  %v420_v8 = vsel %vm418_vm7, 1.0, %v391_v51 }
 0x948   : > { %v423_v9 = vmax.f32 %v421_v5, %v422_v6 }
 0x94a   : > { %424 = vmax.xlane.f32.xlu0 %v423_v9 }
 0x9bd   : > { %v425_v10 = vpop.xlane.xlu0 %424 }
 0x9be   : > { %vm426_vm8 = vcmp.eq.f32.partialorder %v421_v5, %v425_v10  ;;  %vm427_vm9 = vcmp.eq.f32.partialorder %v422_v6, %v425_v10 }
 0x9bf   : > { %v428_v13 = vsel %vm426_vm8, %v910_v11, 256  ;;  %v429_v14 = vsel %vm427_vm9, %v913_v12, 256 }
 0x9c0   : > { %vm430_vm10 = vcmp.lt.s32.totalorder %v428_v13, %v429_v14 }
 0x9c1   : > { %v431_v15 = vsel %vm430_vm10, %v428_v13, %v429_v14 }
 0x9c2   : > { %v433_v16 = vshra.s32 %v431_v15, 16  ;;  %v432_v18 = vand.u32 65535, %v431_v15 }
 0x9c4   : > { %v435_v17 = vcvt.s32.f32 %v433_v16  ;;  %v434_v20 = vcvt.s32.f32 %v432_v18 }
 0x9c6   : > { %436 = vmin.xlane.f32.xlu1 %v435_v17 }
 0xa39   : > { %v437_v19 = vpop.xlane.xlu1 %436 }
 0xa3a   : > { %vm438_vm11 = vcmp.eq.f32.partialorder %v435_v17, %v437_v19  ;;  %v443_v22 = vcvt.f32.s32 %v437_v19 }
 0xa3b   : > { %v439_v21 = vsel %vm438_vm11, %v434_v20, inf }
 0xa3c   : > { %440 = vmin.xlane.f32.xlu2 %v439_v21  ;;  %v444_v24 = vshll.u32 %v443_v22, 16 }
 0xaaf   : > { %v441_v23 = vpop.xlane.xlu2 %440 }
 0xab0   : > { %v442_v25 = vcvt.f32.s32 %v441_v23 }
 0xab2   : > { %v445_v26 = vadd.s32 %v444_v24, %v442_v25 }
 0xab4   : > { %vm446_vm12 = vcmp.eq.s32.totalorder %v910_v11, %v445_v26  ;;  %vm447_vm13 = vcmp.eq.s32.totalorder %v913_v12, %v445_v26 }
 0xab5   : > { %v450_v27 = vsel %vm446_vm12, -inf, %v421_v5  ;;  %v451_v28 = vsel %vm447_vm13, -inf, %v422_v6  ;;  %v448_v29 = vsel %vm446_vm12, 1.0, %v419_v7  ;;  %v449_v30 = vsel %vm447_vm13, 1.0, %v420_v8 }
 0xab6   : > { %v452_v31 = vmax.f32 %v450_v27, %v451_v28 }
 0xab8   : > { %453 = vmax.xlane.f32.xlu0 %v452_v31 }
 0xb2b   : > { %v454_v32 = vpop.xlane.xlu0 %453 }
 0xb2c   : > { %vm455_vm14 = vcmp.eq.f32.partialorder %v450_v27, %v454_v32  ;;  %vm456_vm15 = vcmp.eq.f32.partialorder %v451_v28, %v454_v32 }
 0xb2d   : > { %v457_v33 = vsel %vm455_vm14, %v910_v11, 256  ;;  %v458_v34 = vsel %vm456_vm15, %v913_v12, 256 }
 0xb2e   : > { %vm459_vm1 = vcmp.lt.s32.totalorder %v457_v33, %v458_v34 }
 0xb2f   : > { %v460_v35 = vsel %vm459_vm1, %v457_v33, %v458_v34 }
 0xb30   : > { %v462_v36 = vshra.s32 %v460_v35, 16  ;;  %v461_v38 = vand.u32 65535, %v460_v35 }
 0xb32   : > { %v464_v37 = vcvt.s32.f32 %v462_v36  ;;  %v463_v40 = vcvt.s32.f32 %v461_v38 }
 0xb34   : > { %465 = vmin.xlane.f32.xlu1 %v464_v37 }
 0xba7   : > { %v466_v39 = vpop.xlane.xlu1 %465 }
 0xba8   : > { %vm467_vm2 = vcmp.eq.f32.partialorder %v464_v37, %v466_v39  ;;  %v472_v42 = vcvt.f32.s32 %v466_v39 }
 0xba9   : > { %v468_v41 = vsel %vm467_vm2, %v463_v40, inf }
 0xbaa   : > { %469 = vmin.xlane.f32.xlu2 %v468_v41  ;;  %v473_v44 = vshll.u32 %v472_v42, 16 }
 0xc1d   : > { %v470_v43 = vpop.xlane.xlu2 %469 }
 0xc1e   : > { %v471_v45 = vcvt.f32.s32 %v470_v43 }
 0xc20   : > { %v474_v46 = vadd.s32 %v473_v44, %v471_v45 }
 0xc22   : > { %vm475_vm3 = vcmp.eq.s32.totalorder %v910_v11, %v474_v46  ;;  %vm476_vm4 = vcmp.eq.s32.totalorder %v913_v12, %v474_v46 }
 0xc23   : > { %v477_v48 = vsel %vm475_vm3, 1.0, %v448_v29  ;;  %v478_v49 = vsel %vm476_vm4, 1.0, %v449_v30 }
 0xc24   : > { %498 = vmatpush.msra.mxu2 %v477_v48  ;;  %518 = vmatpush.msra.mxu3 %v478_v49 }
 0xc25   : > { %631 = vmatmul.msk.f32.vlgmr.msra.gmra.mxu3 %vm479_vm5, %v190_v47  ;;  %630 = vmatmul.msk.f32.vlgmr.msra.gmra.mxu2 %vm479_vm5, %v190_v47 }
 0xca8   : > { %v520_v11 = vpop.f32.mrf.mxu3  ;;  %v500_v12 = vpop.f32.mrf.mxu2 }
 0xca9   : > { %v525_v50 = vrot.slane %v520_v11, 4 }
 0xcab   : > { %v526_v51 = vsel %vm201_vm0, %v500_v12, %v525_v50 }
 0xcac   : > { %v528_v52 = vmul.f32 %v526_v51, %v901_v0 }
 0xcae   : > { %529 = vst [vmem:[%s188_s11] sm:$0xff] %v528_v52 }
 0xcaf   : > { %743 = shalt.err (!%p740_p4)
}
 0xcb0   : > { %641 = dma.vmem_to_hbm [thread:$0]  (%p855_p11), %s545_s17, 128, %s547_s19, %s531_s16  }
 0xcb1 PF: > { %s558_s26 = sand.u32 1, %s770_s12   ;;  %p1004_p7 = scmp.ge.s32.totalorder %s782_s15, 2 }
 0xcb2   : > { %s559_s5 = scalar_lea.sflag [#allocation4], %s558_s26 }
 0xcb3   : > { %p648_p5 = pnand %p1004_p7, %p859_p12 }
 0xcb5   : > { %p649_p8 = pneg %p648_p5 }
 0xcb7   : > { %765 = dma.done.wait (%p649_p8), %s559_s5, 128  }
 0xcb8   : > { %767 = vsyncadd (%p649_p8), %s559_s5, 4294967168  ;;  %p16_p10 = scmp.ge.s32.totalorder %s830_s18, 4   ;;  %s1005_s12 = smov %s774_s13 }
 0xcb9   : > { %s1006_s13 = smov %s778_s14  ;;  %s1007_s14 = smov %s842_s21 }
 0xcba   : > { %s1008_s15 = smov %s830_s18  ;;  %18 = sbr.rel (!%p16_p10) target bundleno = 5 (0x5), region = 77 }
 0xcbf   :  { %565 = vsyncpa [#allocation3], 1 }
 0xcc0   :  { %567 = vsyncpa [#allocation3 + $0x1], 1 }
 0xcc1   :  { %568 = vsyncpa [#allocation4], 1 }
 0xcc2   :  { %570 = vsyncpa [#allocation4 + $0x1], 1 }

</bundles_post_ra>
